<compile_context>
chip_gen: v7x
topology: tpu7x:2x2x1
jax: 0.10.0
libtpu: 0.0.40
codegen_flags: <defaults>
</compile_context>

<pallas_src>
import functools

import jax
import jax.numpy as jnp
from jax.experimental import pallas as pl
from jax.experimental.pallas import tpu as pltpu

LANE = 128


def _round_up(x, m):
    return ((x + m - 1) // m) * m


# --------------------------------------------------------------------------
# Kernel: one batch tile of the fused 8-layer autoencoder.
# --------------------------------------------------------------------------
def edesc_ae_kernel(x_ref,
                    w1_ref, b1_ref, w2_ref, b2_ref, w3_ref, b3_ref,
                    wz_ref, bz_ref,
                    w5_ref, b5_ref, w6_ref, b6_ref, w7_ref, b7_ref,
                    wx_ref, bx_ref,
                    xbar_ref, z_ref):
    def lin(h, w_ref, b_ref, relu):
        # bf16 x bf16 matmul on the MXU with f32 accumulation; bias/ReLU in f32
        # (v5e VPU has no bf16 path).
        y = jnp.dot(h.astype(jnp.bfloat16), w_ref[...],
                    preferred_element_type=jnp.float32) + b_ref[...]
        return jnp.maximum(y, 0.0) if relu else y

    h = x_ref[...]                              # bf16, straight into the MXU
    # encoder
    h = lin(h, w1_ref, b1_ref, relu=True)       # enc_1 + relu
    h = lin(h, w2_ref, b2_ref, relu=True)       # enc_2 + relu
    h = lin(h, w3_ref, b3_ref, relu=True)       # enc_3 + relu
    z = lin(h, wz_ref, bz_ref, relu=False)      # z_layer (no activation)
    z_ref[...] = z.astype(z_ref.dtype)          # bf16 writeback
    # decoder
    h = lin(z, w5_ref, b5_ref, relu=True)       # dec_1 + relu
    h = lin(h, w6_ref, b6_ref, relu=True)       # dec_2 + relu
    h = lin(h, w7_ref, b7_ref, relu=True)       # dec_3 + relu
    xbar = lin(h, wx_ref, bx_ref, relu=False)   # x_bar_layer (no activation)
    xbar_ref[...] = xbar.astype(xbar_ref.dtype)  # bf16 writeback


# --------------------------------------------------------------------------
# Parameter construction (PyTorch nn.Linear init), weights stored bf16.
# --------------------------------------------------------------------------
def init_linear_params(key, in_features, out_features):
    """U(-1/sqrt(in), 1/sqrt(in)); weight returned as (in, out) (transposed
    vs. PyTorch) in bf16, bias as (1, out) in f32."""
    kw, kb = jax.random.split(key)
    bound = 1.0 / jnp.sqrt(jnp.asarray(in_features, jnp.float32))
    w = jax.random.uniform(kw, (in_features, out_features), jnp.float32,
                           minval=-bound, maxval=bound).astype(jnp.bfloat16)
    b = jax.random.uniform(kb, (1, out_features), jnp.float32,
                           minval=-bound, maxval=bound)
    return w, b


def make_edesc_ae_params(key, n_input, encoder_dims, decoder_dims, n_z):
    dims = [
        (n_input, encoder_dims[0]),          # enc_1
        (encoder_dims[0], encoder_dims[1]),  # enc_2
        (encoder_dims[1], encoder_dims[2]),  # enc_3
        (encoder_dims[2], n_z),              # z_layer
        (n_z, decoder_dims[0]),              # dec_1
        (decoder_dims[0], decoder_dims[1]),  # dec_2
        (decoder_dims[1], decoder_dims[2]),  # dec_3
        (decoder_dims[2], n_input),          # x_bar_layer
    ]
    keys = jax.random.split(key, len(dims))
    return [init_linear_params(k, fin, fout) for k, (fin, fout) in zip(keys, dims)]


# --------------------------------------------------------------------------
# One-time parameter preparation: pad every feature dim to a multiple of 128
# (lane-dense, exact because padding is zeros) and cast weights to bf16.
# Done ONCE, outside the per-forward path.
# --------------------------------------------------------------------------
def prepare_edesc_ae_params(params):
    padded = []
    for (w, b) in params:
        fin, fout = w.shape
        fin_p, fout_p = _round_up(fin, LANE), _round_up(fout, LANE)
        w_p = jnp.zeros((fin_p, fout_p), jnp.bfloat16).at[:fin, :fout].set(
            w.astype(jnp.bfloat16))
        b_p = jnp.zeros((1, fout_p), jnp.float32).at[:, :fout].set(
            b.astype(jnp.float32).reshape(1, fout))
        padded.append((w_p, b_p))
    return padded


# --------------------------------------------------------------------------
# Batch tiling policy:
#   * pad B to a multiple of 16 (bf16 sublane packing),
#   * pick the tile as an exact divisor of B_pad (no up-to-tile_b-1 waste),
#   * guarantee >= 2 grid steps whenever B_pad >= 32 so the "parallel" batch
#     axis shards across both v7x TensorCores.
# --------------------------------------------------------------------------
def _choose_batch_tiling(B, tile_b):
    B16 = _round_up(B, 16)
    if B16 >= 32:
        num_steps = max(2, -(-B16 // tile_b))
    else:
        num_steps = 1
    tile_b_eff = _round_up(-(-B16 // num_steps), 16)
    B_pad = tile_b_eff * num_steps
    return tile_b_eff, B_pad, num_steps


# --------------------------------------------------------------------------
# Forward: padding / tiling / pallas_call.  Takes PRE-PADDED params.
# Returns (x_bar, z) in bf16 (the kernel's writeback dtype).
# --------------------------------------------------------------------------
@functools.partial(jax.jit, static_argnames=("n_z", "tile_b"))
def edesc_ae_forward(x, padded_params, *, n_z, tile_b=512):
    B, n_input = x.shape

    d_in_p = padded_params[0][0].shape[0]     # padded n_input
    d_z_p = padded_params[3][0].shape[1]      # padded n_z

    tile_b_eff, B_pad, num_steps = _choose_batch_tiling(B, tile_b)
    grid = (num_steps,)

    # ---- x streamed in bf16 (dominant per-step HBM stream halved) ----
    x_p = jnp.zeros((B_pad, d_in_p), jnp.bfloat16).at[:B, :n_input].set(
        x.astype(jnp.bfloat16))

    flat_args = [x_p]
    in_specs = [pl.BlockSpec((tile_b_eff, d_in_p), lambda i: (i, 0))]
    for (w_p, b_p) in padded_params:
        flat_args += [w_p, b_p]
        in_specs += [pl.BlockSpec(w_p.shape, lambda i: (0, 0)),   # VMEM-resident
                     pl.BlockSpec(b_p.shape, lambda i: (0, 0))]

    out_specs = (pl.BlockSpec((tile_b_eff, d_in_p), lambda i: (i, 0)),
                 pl.BlockSpec((tile_b_eff, d_z_p), lambda i: (i, 0)))
    out_shape = (jax.ShapeDtypeStruct((B_pad, d_in_p), jnp.bfloat16),
                 jax.ShapeDtypeStruct((B_pad, d_z_p), jnp.bfloat16))

    # ---- advisory cost model so XLA schedules around the custom call ----
    flops = 2 * B_pad * sum(w.shape[0] * w.shape[1] for w, _ in padded_params)
    bytes_accessed = (x_p.size * 2
                      + sum(w.size * 2 + b.size * 4 for w, b in padded_params)
                      + B_pad * (d_in_p + d_z_p) * 2)
    cost = pl.CostEstimate(flops=flops, transcendentals=0,
                           bytes_accessed=bytes_accessed)

    # ---- actual VMEM need (x1.5 headroom), capped at v7x's 64 MiB ----
    weight_bytes = sum(w.size * 2 + b.size * 4 for w, b in padded_params)
    d_max = max(max(w.shape) for w, _ in padded_params)
    io_tile_bytes = 2 * 2 * tile_b_eff * (2 * d_in_p + d_z_p)   # dbl-buffered bf16 x/xbar/z
    act_bytes = 2 * 4 * tile_b_eff * d_max                      # f32 live activations
    need = weight_bytes + io_tile_bytes + act_bytes
    if need > 48 * 2**20:
        # TODO(synk): for very wide encoders (>~48 MiB resident on v7x's 64 MiB
        # VMEM) stream the largest weights via a BlockSpec over the
        # output-feature axis instead of keeping all weights VMEM-resident.
        raise ValueError(
            f"EDESC_AE weights/buffers ({need/2**20:.1f} MiB) exceed the "
            f"full-residency budget; streaming fallback not implemented.")
    vmem_limit = int(min(max(int(need * 1.5), 2 * 2**20), 64 * 2**20))

    x_bar_p, z_p = pl.pallas_call(
        edesc_ae_kernel,
        grid=grid,
        in_specs=in_specs,
        out_specs=out_specs,
        out_shape=out_shape,
        compiler_params=pltpu.CompilerParams(
            dimension_semantics=("parallel",),
            vmem_limit_bytes=vmem_limit),
        cost_estimate=cost,
    )(*flat_args)

    return x_bar_p[:B, :n_input], z_p[:B, :n_z]


# --------------------------------------------------------------------------
# Pure-JAX reference mimicking the kernel's dtype flow (bf16 matmul inputs,
# f32 accumulation / bias / ReLU), for a tight correctness check.
# --------------------------------------------------------------------------
def edesc_ae_reference(x, params):
    h = x.astype(jnp.float32)
    z = None
    for i, (w, b) in enumerate(params):
        y = jnp.dot(h.astype(jnp.bfloat16), w.astype(jnp.bfloat16),
                    preferred_element_type=jnp.float32)
        y = y + b.astype(jnp.float32).reshape(1, -1)
        if i in (0, 1, 2, 4, 5, 6):   # ReLU on enc_1..3 and dec_1..3
            y = jnp.maximum(y, 0.0)
        if i == 3:                    # z_layer output
            z = y
        h = y
    return h, z


if __name__ == "__main__":
    # Small shapes consistent with the module's forward.
    batch = 8
    n_input = 64
    encoder_dims = [128, 64, 32]
    n_z = 16
    decoder_dims = [32, 64, 128]

    key = jax.random.PRNGKey(0)
    key_x, key_p = jax.random.split(key)
    x = jax.random.normal(key_x, (batch, n_input), dtype=jnp.float32)
    params = make_edesc_ae_params(key_p, n_input, encoder_dims, decoder_dims, n_z)

    # One-time parameter preparation (hoisted out of the forward path).
    padded_params = prepare_edesc_ae_params(params)

    x_bar, z = edesc_ae_forward(x, padded_params, n_z=n_z)
    jax.block_until_ready((x_bar, z))

    # Correctness check against the pure-JAX reference (outputs are bf16).
    x_bar_ref, z_ref = edesc_ae_reference(x, params)
    assert x_bar.shape == (batch, n_input) and z.shape == (batch, n_z)
    assert jnp.allclose(x_bar.astype(jnp.float32), x_bar_ref, atol=2e-2, rtol=2e-2)
    assert jnp.allclose(z.astype(jnp.float32), z_ref, atol=2e-2, rtol=2e-2)

    print("KERNEL_OK")
</pallas_src>

<mosaic_0001>
module attributes {stable_mosaic.version = 11 : i64} {
  func.func @edesc_ae_kernel(%arg0: i32, %arg1: memref<16x128xbf16, #tpu.memory_space<vmem>>, %arg2: memref<128x128xbf16, #tpu.memory_space<vmem>>, %arg3: memref<1x128xf32, #tpu.memory_space<vmem>>, %arg4: memref<128x128xbf16, #tpu.memory_space<vmem>>, %arg5: memref<1x128xf32, #tpu.memory_space<vmem>>, %arg6: memref<128x128xbf16, #tpu.memory_space<vmem>>, %arg7: memref<1x128xf32, #tpu.memory_space<vmem>>, %arg8: memref<128x128xbf16, #tpu.memory_space<vmem>>, %arg9: memref<1x128xf32, #tpu.memory_space<vmem>>, %arg10: memref<128x128xbf16, #tpu.memory_space<vmem>>, %arg11: memref<1x128xf32, #tpu.memory_space<vmem>>, %arg12: memref<128x128xbf16, #tpu.memory_space<vmem>>, %arg13: memref<1x128xf32, #tpu.memory_space<vmem>>, %arg14: memref<128x128xbf16, #tpu.memory_space<vmem>>, %arg15: memref<1x128xf32, #tpu.memory_space<vmem>>, %arg16: memref<128x128xbf16, #tpu.memory_space<vmem>>, %arg17: memref<1x128xf32, #tpu.memory_space<vmem>>, %arg18: memref<16x128xbf16, #tpu.memory_space<vmem>>, %arg19: memref<16x128xbf16, #tpu.memory_space<vmem>>) attributes {dimension_semantics = [#tpu.dimension_semantics<parallel>], iteration_bounds = array<i64: 1>, scalar_prefetch = 0 : i64, scratch_operands = 0 : i64, tpu.core_type = #tpu.core_type<tc>, window_params = [{transform_indices = @transform_0, window_bounds = array<i64: 16, 128>}, {pipeline_mode = #tpu.pipeline_mode<synchronous>, transform_indices = @transform_1, window_bounds = array<i64: 128, 128>}, {pipeline_mode = #tpu.pipeline_mode<synchronous>, transform_indices = @transform_2, window_bounds = array<i64: 1, 128>}, {pipeline_mode = #tpu.pipeline_mode<synchronous>, transform_indices = @transform_3, window_bounds = array<i64: 128, 128>}, {pipeline_mode = #tpu.pipeline_mode<synchronous>, transform_indices = @transform_4, window_bounds = array<i64: 1, 128>}, {pipeline_mode = #tpu.pipeline_mode<synchronous>, transform_indices = @transform_5, window_bounds = array<i64: 128, 128>}, {pipeline_mode = #tpu.pipeline_mode<synchronous>, transform_indices = @transform_6, window_bounds = array<i64: 1, 128>}, {pipeline_mode = #tpu.pipeline_mode<synchronous>, transform_indices = @transform_7, window_bounds = array<i64: 128, 128>}, {pipeline_mode = #tpu.pipeline_mode<synchronous>, transform_indices = @transform_8, window_bounds = array<i64: 1, 128>}, {pipeline_mode = #tpu.pipeline_mode<synchronous>, transform_indices = @transform_9, window_bounds = array<i64: 128, 128>}, {pipeline_mode = #tpu.pipeline_mode<synchronous>, transform_indices = @transform_10, window_bounds = array<i64: 1, 128>}, {pipeline_mode = #tpu.pipeline_mode<synchronous>, transform_indices = @transform_11, window_bounds = array<i64: 128, 128>}, {pipeline_mode = #tpu.pipeline_mode<synchronous>, transform_indices = @transform_12, window_bounds = array<i64: 1, 128>}, {pipeline_mode = #tpu.pipeline_mode<synchronous>, transform_indices = @transform_13, window_bounds = array<i64: 128, 128>}, {pipeline_mode = #tpu.pipeline_mode<synchronous>, transform_indices = @transform_14, window_bounds = array<i64: 1, 128>}, {pipeline_mode = #tpu.pipeline_mode<synchronous>, transform_indices = @transform_15, window_bounds = array<i64: 128, 128>}, {pipeline_mode = #tpu.pipeline_mode<synchronous>, transform_indices = @transform_16, window_bounds = array<i64: 1, 128>}, {transform_indices = @transform_17, window_bounds = array<i64: 16, 128>}, {transform_indices = @transform_18, window_bounds = array<i64: 16, 128>}]} {
    %c0 = arith.constant 0 : index
    %c0_0 = arith.constant 0 : index
    %0 = vector.load %arg1[%c0, %c0_0] : memref<16x128xbf16, #tpu.memory_space<vmem>>, vector<16x128xbf16>
    %c0_1 = arith.constant 0 : index
    %c0_2 = arith.constant 0 : index
    %1 = vector.load %arg2[%c0_1, %c0_2] : memref<128x128xbf16, #tpu.memory_space<vmem>>, vector<128x128xbf16>
    %cst = arith.constant dense<0.000000e+00> : vector<16x128xf32>
    %2 = tpu.matmul %0, %1, %cst {dimension_numbers = #tpu.dot_dimension_numbers<[1], [0], [0], [1], [0, 0, 1, 1], [], []>} : vector<16x128xbf16>, vector<128x128xbf16>, vector<16x128xf32> -> vector<16x128xf32>
    %c0_3 = arith.constant 0 : index
    %c0_4 = arith.constant 0 : index
    %3 = vector.load %arg3[%c0_3, %c0_4] : memref<1x128xf32, #tpu.memory_space<vmem>>, vector<1x128xf32>
    %4 = vector.broadcast %3 : vector<1x128xf32> to vector<16x128xf32>
    %5 = arith.addf %2, %4 : vector<16x128xf32>
    %cst_5 = arith.constant 0.000000e+00 : f32
    %6 = vector.broadcast %cst_5 : f32 to vector<16x128xf32>
    %7 = arith.maximumf %5, %6 : vector<16x128xf32>
    %8 = arith.truncf %7 : vector<16x128xf32> to vector<16x128xbf16>
    %c0_6 = arith.constant 0 : index
    %c0_7 = arith.constant 0 : index
    %9 = vector.load %arg4[%c0_6, %c0_7] : memref<128x128xbf16, #tpu.memory_space<vmem>>, vector<128x128xbf16>
    %cst_8 = arith.constant dense<0.000000e+00> : vector<16x128xf32>
    %10 = tpu.matmul %8, %9, %cst_8 {dimension_numbers = #tpu.dot_dimension_numbers<[1], [0], [0], [1], [0, 0, 1, 1], [], []>} : vector<16x128xbf16>, vector<128x128xbf16>, vector<16x128xf32> -> vector<16x128xf32>
    %c0_9 = arith.constant 0 : index
    %c0_10 = arith.constant 0 : index
    %11 = vector.load %arg5[%c0_9, %c0_10] : memref<1x128xf32, #tpu.memory_space<vmem>>, vector<1x128xf32>
    %12 = vector.broadcast %11 : vector<1x128xf32> to vector<16x128xf32>
    %13 = arith.addf %10, %12 : vector<16x128xf32>
    %cst_11 = arith.constant 0.000000e+00 : f32
    %14 = vector.broadcast %cst_11 : f32 to vector<16x128xf32>
    %15 = arith.maximumf %13, %14 : vector<16x128xf32>
    %16 = arith.truncf %15 : vector<16x128xf32> to vector<16x128xbf16>
    %c0_12 = arith.constant 0 : index
    %c0_13 = arith.constant 0 : index
    %17 = vector.load %arg6[%c0_12, %c0_13] : memref<128x128xbf16, #tpu.memory_space<vmem>>, vector<128x128xbf16>
    %cst_14 = arith.constant dense<0.000000e+00> : vector<16x128xf32>
    %18 = tpu.matmul %16, %17, %cst_14 {dimension_numbers = #tpu.dot_dimension_numbers<[1], [0], [0], [1], [0, 0, 1, 1], [], []>} : vector<16x128xbf16>, vector<128x128xbf16>, vector<16x128xf32> -> vector<16x128xf32>
    %c0_15 = arith.constant 0 : index
    %c0_16 = arith.constant 0 : index
    %19 = vector.load %arg7[%c0_15, %c0_16] : memref<1x128xf32, #tpu.memory_space<vmem>>, vector<1x128xf32>
    %20 = vector.broadcast %19 : vector<1x128xf32> to vector<16x128xf32>
    %21 = arith.addf %18, %20 : vector<16x128xf32>
    %cst_17 = arith.constant 0.000000e+00 : f32
    %22 = vector.broadcast %cst_17 : f32 to vector<16x128xf32>
    %23 = arith.maximumf %21, %22 : vector<16x128xf32>
    %24 = arith.truncf %23 : vector<16x128xf32> to vector<16x128xbf16>
    %c0_18 = arith.constant 0 : index
    %c0_19 = arith.constant 0 : index
    %25 = vector.load %arg8[%c0_18, %c0_19] : memref<128x128xbf16, #tpu.memory_space<vmem>>, vector<128x128xbf16>
    %cst_20 = arith.constant dense<0.000000e+00> : vector<16x128xf32>
    %26 = tpu.matmul %24, %25, %cst_20 {dimension_numbers = #tpu.dot_dimension_numbers<[1], [0], [0], [1], [0, 0, 1, 1], [], []>} : vector<16x128xbf16>, vector<128x128xbf16>, vector<16x128xf32> -> vector<16x128xf32>
    %c0_21 = arith.constant 0 : index
    %c0_22 = arith.constant 0 : index
    %27 = vector.load %arg9[%c0_21, %c0_22] : memref<1x128xf32, #tpu.memory_space<vmem>>, vector<1x128xf32>
    %28 = vector.broadcast %27 : vector<1x128xf32> to vector<16x128xf32>
    %29 = arith.addf %26, %28 : vector<16x128xf32>
    %30 = arith.truncf %29 : vector<16x128xf32> to vector<16x128xbf16>
    %c0_23 = arith.constant 0 : index
    %c0_24 = arith.constant 0 : index
    %31 = vector.load %arg19[%c0_23, %c0_24] : memref<16x128xbf16, #tpu.memory_space<vmem>>, vector<16x128xbf16>
    tpu.vector_store %arg19[%c0_23, %c0_24], %30 {strides = array<i32>} : memref<16x128xbf16, #tpu.memory_space<vmem>>, vector<16x128xbf16>,
    %32 = arith.truncf %29 : vector<16x128xf32> to vector<16x128xbf16>
    %c0_25 = arith.constant 0 : index
    %c0_26 = arith.constant 0 : index
    %33 = vector.load %arg10[%c0_25, %c0_26] : memref<128x128xbf16, #tpu.memory_space<vmem>>, vector<128x128xbf16>
    %cst_27 = arith.constant dense<0.000000e+00> : vector<16x128xf32>
    %34 = tpu.matmul %32, %33, %cst_27 {dimension_numbers = #tpu.dot_dimension_numbers<[1], [0], [0], [1], [0, 0, 1, 1], [], []>} : vector<16x128xbf16>, vector<128x128xbf16>, vector<16x128xf32> -> vector<16x128xf32>
    %c0_28 = arith.constant 0 : index
    %c0_29 = arith.constant 0 : index
    %35 = vector.load %arg11[%c0_28, %c0_29] : memref<1x128xf32, #tpu.memory_space<vmem>>, vector<1x128xf32>
    %36 = vector.broadcast %35 : vector<1x128xf32> to vector<16x128xf32>
    %37 = arith.addf %34, %36 : vector<16x128xf32>
    %cst_30 = arith.constant 0.000000e+00 : f32
    %38 = vector.broadcast %cst_30 : f32 to vector<16x128xf32>
    %39 = arith.maximumf %37, %38 : vector<16x128xf32>
    %40 = arith.truncf %39 : vector<16x128xf32> to vector<16x128xbf16>
    %c0_31 = arith.constant 0 : index
    %c0_32 = arith.constant 0 : index
    %41 = vector.load %arg12[%c0_31, %c0_32] : memref<128x128xbf16, #tpu.memory_space<vmem>>, vector<128x128xbf16>
    %cst_33 = arith.constant dense<0.000000e+00> : vector<16x128xf32>
    %42 = tpu.matmul %40, %41, %cst_33 {dimension_numbers = #tpu.dot_dimension_numbers<[1], [0], [0], [1], [0, 0, 1, 1], [], []>} : vector<16x128xbf16>, vector<128x128xbf16>, vector<16x128xf32> -> vector<16x128xf32>
    %c0_34 = arith.constant 0 : index
    %c0_35 = arith.constant 0 : index
    %43 = vector.load %arg13[%c0_34, %c0_35] : memref<1x128xf32, #tpu.memory_space<vmem>>, vector<1x128xf32>
    %44 = vector.broadcast %43 : vector<1x128xf32> to vector<16x128xf32>
    %45 = arith.addf %42, %44 : vector<16x128xf32>
    %cst_36 = arith.constant 0.000000e+00 : f32
    %46 = vector.broadcast %cst_36 : f32 to vector<16x128xf32>
    %47 = arith.maximumf %45, %46 : vector<16x128xf32>
    %48 = arith.truncf %47 : vector<16x128xf32> to vector<16x128xbf16>
    %c0_37 = arith.constant 0 : index
    %c0_38 = arith.constant 0 : index
    %49 = vector.load %arg14[%c0_37, %c0_38] : memref<128x128xbf16, #tpu.memory_space<vmem>>, vector<128x128xbf16>
    %cst_39 = arith.constant dense<0.000000e+00> : vector<16x128xf32>
    %50 = tpu.matmul %48, %49, %cst_39 {dimension_numbers = #tpu.dot_dimension_numbers<[1], [0], [0], [1], [0, 0, 1, 1], [], []>} : vector<16x128xbf16>, vector<128x128xbf16>, vector<16x128xf32> -> vector<16x128xf32>
    %c0_40 = arith.constant 0 : index
    %c0_41 = arith.constant 0 : index
    %51 = vector.load %arg15[%c0_40, %c0_41] : memref<1x128xf32, #tpu.memory_space<vmem>>, vector<1x128xf32>
    %52 = vector.broadcast %51 : vector<1x128xf32> to vector<16x128xf32>
    %53 = arith.addf %50, %52 : vector<16x128xf32>
    %cst_42 = arith.constant 0.000000e+00 : f32
    %54 = vector.broadcast %cst_42 : f32 to vector<16x128xf32>
    %55 = arith.maximumf %53, %54 : vector<16x128xf32>
    %56 = arith.truncf %55 : vector<16x128xf32> to vector<16x128xbf16>
    %c0_43 = arith.constant 0 : index
    %c0_44 = arith.constant 0 : index
    %57 = vector.load %arg16[%c0_43, %c0_44] : memref<128x128xbf16, #tpu.memory_space<vmem>>, vector<128x128xbf16>
    %cst_45 = arith.constant dense<0.000000e+00> : vector<16x128xf32>
    %58 = tpu.matmul %56, %57, %cst_45 {dimension_numbers = #tpu.dot_dimension_numbers<[1], [0], [0], [1], [0, 0, 1, 1], [], []>} : vector<16x128xbf16>, vector<128x128xbf16>, vector<16x128xf32> -> vector<16x128xf32>
    %c0_46 = arith.constant 0 : index
    %c0_47 = arith.constant 0 : index
    %59 = vector.load %arg17[%c0_46, %c0_47] : memref<1x128xf32, #tpu.memory_space<vmem>>, vector<1x128xf32>
    %60 = vector.broadcast %59 : vector<1x128xf32> to vector<16x128xf32>
    %61 = arith.addf %58, %60 : vector<16x128xf32>
    %62 = arith.truncf %61 : vector<16x128xf32> to vector<16x128xbf16>
    %c0_48 = arith.constant 0 : index
    %c0_49 = arith.constant 0 : index
    %63 = vector.load %arg18[%c0_48, %c0_49] : memref<16x128xbf16, #tpu.memory_space<vmem>>, vector<16x128xbf16>
    tpu.vector_store %arg18[%c0_48, %c0_49], %62 {strides = array<i32>} : memref<16x128xbf16, #tpu.memory_space<vmem>>, vector<16x128xbf16>,
    return
  }
  func.func @transform_0(%arg0: i32) -> (i32, i32) {
    %c0_i32 = arith.constant 0 : i32
    %c0_i32_0 = arith.constant 0 : i32
    return %arg0, %c0_i32 : i32, i32
  }
  func.func @transform_1(%arg0: i32) -> (i32, i32) {
    %c0_i32 = arith.constant 0 : i32
    %c0_i32_0 = arith.constant 0 : i32
    %c0_i32_1 = arith.constant 0 : i32
    return %c0_i32, %c0_i32_0 : i32, i32
  }
  func.func @transform_2(%arg0: i32) -> (i32, i32) {
    %c0_i32 = arith.constant 0 : i32
    %c0_i32_0 = arith.constant 0 : i32
    %c0_i32_1 = arith.constant 0 : i32
    return %c0_i32, %c0_i32_0 : i32, i32
  }
  func.func @transform_3(%arg0: i32) -> (i32, i32) {
    %c0_i32 = arith.constant 0 : i32
    %c0_i32_0 = arith.constant 0 : i32
    %c0_i32_1 = arith.constant 0 : i32
    return %c0_i32, %c0_i32_0 : i32, i32
  }
  func.func @transform_4(%arg0: i32) -> (i32, i32) {
    %c0_i32 = arith.constant 0 : i32
    %c0_i32_0 = arith.constant 0 : i32
    %c0_i32_1 = arith.constant 0 : i32
    return %c0_i32, %c0_i32_0 : i32, i32
  }
  func.func @transform_5(%arg0: i32) -> (i32, i32) {
    %c0_i32 = arith.constant 0 : i32
    %c0_i32_0 = arith.constant 0 : i32
    %c0_i32_1 = arith.constant 0 : i32
    return %c0_i32, %c0_i32_0 : i32, i32
  }
  func.func @transform_6(%arg0: i32) -> (i32, i32) {
    %c0_i32 = arith.constant 0 : i32
    %c0_i32_0 = arith.constant 0 : i32
    %c0_i32_1 = arith.constant 0 : i32
    return %c0_i32, %c0_i32_0 : i32, i32
  }
  func.func @transform_7(%arg0: i32) -> (i32, i32) {
    %c0_i32 = arith.constant 0 : i32
    %c0_i32_0 = arith.constant 0 : i32
    %c0_i32_1 = arith.constant 0 : i32
    return %c0_i32, %c0_i32_0 : i32, i32
  }
  func.func @transform_8(%arg0: i32) -> (i32, i32) {
    %c0_i32 = arith.constant 0 : i32
    %c0_i32_0 = arith.constant 0 : i32
    %c0_i32_1 = arith.constant 0 : i32
    return %c0_i32, %c0_i32_0 : i32, i32
  }
  func.func @transform_9(%arg0: i32) -> (i32, i32) {
    %c0_i32 = arith.constant 0 : i32
    %c0_i32_0 = arith.constant 0 : i32
    %c0_i32_1 = arith.constant 0 : i32
    return %c0_i32, %c0_i32_0 : i32, i32
  }
  func.func @transform_10(%arg0: i32) -> (i32, i32) {
    %c0_i32 = arith.constant 0 : i32
    %c0_i32_0 = arith.constant 0 : i32
    %c0_i32_1 = arith.constant 0 : i32
    return %c0_i32, %c0_i32_0 : i32, i32
  }
  func.func @transform_11(%arg0: i32) -> (i32, i32) {
    %c0_i32 = arith.constant 0 : i32
    %c0_i32_0 = arith.constant 0 : i32
    %c0_i32_1 = arith.constant 0 : i32
    return %c0_i32, %c0_i32_0 : i32, i32
  }
  func.func @transform_12(%arg0: i32) -> (i32, i32) {
    %c0_i32 = arith.constant 0 : i32
    %c0_i32_0 = arith.constant 0 : i32
    %c0_i32_1 = arith.constant 0 : i32
    return %c0_i32, %c0_i32_0 : i32, i32
  }
  func.func @transform_13(%arg0: i32) -> (i32, i32) {
    %c0_i32 = arith.constant 0 : i32
    %c0_i32_0 = arith.constant 0 : i32
    %c0_i32_1 = arith.constant 0 : i32
    return %c0_i32, %c0_i32_0 : i32, i32
  }
  func.func @transform_14(%arg0: i32) -> (i32, i32) {
    %c0_i32 = arith.constant 0 : i32
    %c0_i32_0 = arith.constant 0 : i32
    %c0_i32_1 = arith.constant 0 : i32
    return %c0_i32, %c0_i32_0 : i32, i32
  }
  func.func @transform_15(%arg0: i32) -> (i32, i32) {
    %c0_i32 = arith.constant 0 : i32
    %c0_i32_0 = arith.constant 0 : i32
    %c0_i32_1 = arith.constant 0 : i32
    return %c0_i32, %c0_i32_0 : i32, i32
  }
  func.func @transform_16(%arg0: i32) -> (i32, i32) {
    %c0_i32 = arith.constant 0 : i32
    %c0_i32_0 = arith.constant 0 : i32
    %c0_i32_1 = arith.constant 0 : i32
    return %c0_i32, %c0_i32_0 : i32, i32
  }
  func.func @transform_17(%arg0: i32) -> (i32, i32) {
    %c0_i32 = arith.constant 0 : i32
    %c0_i32_0 = arith.constant 0 : i32
    return %arg0, %c0_i32 : i32, i32
  }
  func.func @transform_18(%arg0: i32) -> (i32, i32) {
    %c0_i32 = arith.constant 0 : i32
    %c0_i32_0 = arith.constant 0 : i32
    return %arg0, %c0_i32 : i32, i32
  }
}

</mosaic_0001>

<bundles_post_ra>
// kernel: edesc_ae_forward.1
= control target key start
LH: loop header
LB: loop body
LE: loop exit
PB: predicated region body
PF: predicated region fallthrough
CT: control target
= control target key end

     0   :  { %s2186_s0 = inlined_call_operand.vmem [shape: bf16[16,128], index: 0, kind: input, shape index: {}]   ;;  %s2187_s1 = inlined_call_operand.hbm [shape: bf16[128,128], index: 1, kind: input, shape index: {}]   ;;  %s2188_s2 = inlined_call_operand.vmem [shape: f32[1,128], index: 2, kind: input, shape index: {}]   ;;  %s2189_s3 = inlined_call_operand.hbm [shape: bf16[128,128], index: 3, kind: input, shape index: {}]   ;;  %s2190_s4 = inlined_call_operand.vmem [shape: f32[1,128], index: 4, kind: input, shape index: {}]   ;;  %s2191_s5 = inlined_call_operand.hbm [shape: bf16[128,128], index: 5, kind: input, shape index: {}]   ;;  %s2192_s6 = inlined_call_operand.hbm [shape: f32[1,128], index: 6, kind: input, shape index: {}]   ;;  %s2193_s7 = inlined_call_operand.hbm [shape: bf16[128,128], index: 7, kind: input, shape index: {}]   ;;  %s2194_s8 = inlined_call_operand.hbm [shape: f32[1,128], index: 8, kind: input, shape index: {}]   ;;  %s2195_s9 = inlined_call_operand.hbm [shape: bf16[128,128], index: 9, kind: input, shape index: {}]   ;;  %s2196_s10 = inlined_call_operand.hbm [shape: f32[1,128], index: 10, kind: input, shape index: {}]   ;;  %s2197_s11 = inlined_call_operand.vmem [shape: bf16[128,128], index: 11, kind: input, shape index: {}]   ;;  %s2198_s12 = inlined_call_operand.vmem [shape: f32[1,128], index: 12, kind: input, shape index: {}]   ;;  %s2199_s13 = inlined_call_operand.hbm [shape: bf16[128,128], index: 13, kind: input, shape index: {}]   ;;  %s2200_s14 = inlined_call_operand.vmem [shape: f32[1,128], index: 14, kind: input, shape index: {}]   ;;  %s2201_s15 = inlined_call_operand.hbm [shape: bf16[128,128], index: 15, kind: input, shape index: {}]   ;;  %s2202_s16 = inlined_call_operand.vmem [shape: f32[1,128], index: 16, kind: input, shape index: {}]   ;;  %s2203_s17 = inlined_call_operand.vmem [shape: bf16[16,128], index: 17, kind: output, shape index: {0}]   ;;  %s2204_s18 = inlined_call_operand.vmem [shape: bf16[16,128], index: 18, kind: output, shape index: {1}]  }
   0x1   :  { %2206 = sst [smem:[#allocation24_spill]] %s2186_s0 }
   0x2   :  { %2207 = sst [smem:[#allocation25_spill]] %s2187_s1 }
   0x3   :  { %2208 = sst [smem:[#allocation26_spill]] %s2188_s2 }
   0x4   :  { %24 = vsyncpa [#allocation3], 0 }
   0x5   :  { %25 = vsyncpa [#allocation5], 0 }
   0x6   :  { %26 = vsyncpa [#allocation8], 0 }
   0x7   :  { %27 = vsyncpa [#allocation11], 0 }
   0x8   :  { %28 = vsyncpa [#allocation14], 0 }
   0x9   :  { %29 = vsyncpa [#allocation17], 0  ;;  %s1779_s27 = smov [#allocation4]   ;;  %s1780_s29 = smov [#allocation7]  }
   0xa   :  { %s51_s28 = sshll.u32 %s1779_s27, 4  ;;  %s78_s30 = sshll.u32 %s1780_s29, 4  ;;  %s52_s28 = int_to_ptr.vmem [resolvable:$true] %s51_s28  ;;  %s1888_s30 = int_to_ptr.vmem [resolvable:$true] %s78_s30 }
   0xb   :  { %s1547_s1 = scalar_lea.hbm %s2189_s3, 1024 }
   0xc   :  { %p1548_p0 = scmp.ne.s32.totalorder %s2189_s3, %s1547_s1  ;;  %p1551_p1 = scmp.lt.u32.totalorder %s1547_s1, %s2189_s3 }
   0xe   :  { %p1553_p2 = pnand %p1551_p1, %p1548_p0 }
  0x10   :  { %1556 = shalt.err (!%p1553_p2)
}
  0x11   :  { %s1557_s23 = scalar_lea.vmem %s52_s28, 1024  ;;  %p1562_p4 = scmp.lt.s32.totalorder %s52_s28, %s52_s28 }
  0x12   :  { %p1558_p3 = scmp.ne.s32.totalorder %s52_s28, %s1557_s23  ;;  %p1563_p5 = scmp.lt.s32.totalorder %s1557_s23, %s1557_s23 }
  0x14   :  { %p1564_p6 = por %p1563_p5, %p1562_p4 }
  0x16   :  { %p1565_p7 = pnand %p1564_p6, %p1558_p3 }
  0x18   :  { %1568 = shalt.err (!%p1565_p7)
}
  0x19   :  { %s1781_s24 = smov 64   ;;  %s1782_s25 = smov 4  }
  0x1a   :  { %57 = dma.hbm_to_vmem [thread:$0]  %s2189_s3, 1024, %s52_s28, [#allocation5], %s1781_s24, %s1781_s24, %s1782_s25  }
  0x1b   :  { %s1569_s19 = scalar_lea.hbm %s2192_s6, 16 }
  0x1c   :  { %p1570_p8 = scmp.ne.s32.totalorder %s2192_s6, %s1569_s19  ;;  %p1573_p9 = scmp.lt.u32.totalorder %s1569_s19, %s2192_s6 }
  0x1e   :  { %p1575_p10 = pnand %p1573_p9, %p1570_p8 }
  0x20   :  { %1578 = shalt.err (!%p1575_p10)
}
  0x21   :  { %s1579_s2 = scalar_lea.vmem %s1888_s30, 16  ;;  %s1583_s3 = scalar_lea.vmem %s1888_s30, 32 }
  0x22   :  { %p1580_p11 = scmp.ne.s32.totalorder %s1888_s30, %s1579_s2  ;;  %p1584_p12 = scmp.lt.s32.totalorder %s1888_s30, %s1888_s30 }
  0x23   :  { %p1585_p13 = scmp.lt.s32.totalorder %s1583_s3, %s1579_s2 }
  0x25   :  { %p1586_p0 = por %p1585_p13, %p1584_p12 }
  0x27   :  { %p1587_p1 = pnand %p1586_p0, %p1580_p11 }
  0x29   :  { %1590 = shalt.err (!%p1587_p1)
}
  0x2a   :  { %81 = dma.hbm_to_vmem [thread:$0]  %s2192_s6, 16, %s1888_s30, [#allocation8]  }
  0x2b   :  { %s1783_s26 = smov [#allocation10]   ;;  %s1784_s29 = smov [#allocation13]  }
  0x2c   :  { %s100_s27 = sshll.u32 %s1783_s26, 4  ;;  %s122_s0 = sshll.u32 %s1784_s29, 4  ;;  %s101_s27 = int_to_ptr.vmem [resolvable:$true] %s100_s27  ;;  %s123_s0 = int_to_ptr.vmem [resolvable:$true] %s122_s0 }
  0x2d   :  { %s1591_s20 = scalar_lea.hbm %s2194_s8, 16 }
  0x2e   :  { %p1592_p2 = scmp.ne.s32.totalorder %s2194_s8, %s1591_s20  ;;  %p1595_p3 = scmp.lt.u32.totalorder %s1591_s20, %s2194_s8 }
  0x30   :  { %p1597_p4 = pnand %p1595_p3, %p1592_p2 }
  0x32   :  { %1600 = shalt.err (!%p1597_p4)
}
  0x33   :  { %s1601_s6 = scalar_lea.vmem %s101_s27, 16  ;;  %s1605_s30 = scalar_lea.vmem %s101_s27, 32 }
  0x34   :  { %p1602_p5 = scmp.ne.s32.totalorder %s101_s27, %s1601_s6  ;;  %p1606_p6 = scmp.lt.s32.totalorder %s101_s27, %s101_s27 }
  0x35   :  { %p1607_p7 = scmp.lt.s32.totalorder %s1605_s30, %s1601_s6 }
  0x37   :  { %p1608_p8 = por %p1607_p7, %p1606_p6 }
  0x39   :  { %p1609_p9 = pnand %p1608_p8, %p1602_p5 }
  0x3b   :  { %1612 = shalt.err (!%p1609_p9)
}
  0x3c   :  { %103 = dma.hbm_to_vmem [thread:$0]  %s2194_s8, 16, %s101_s27, [#allocation11]  }
  0x3d   :  { %s1613_s19 = scalar_lea.hbm %s2196_s10, 16 }
  0x3e   :  { %p1614_p10 = scmp.ne.s32.totalorder %s2196_s10, %s1613_s19  ;;  %p1617_p11 = scmp.lt.u32.totalorder %s1613_s19, %s2196_s10 }
  0x40   :  { %p1619_p12 = pnand %p1617_p11, %p1614_p10 }
  0x42   :  { %1622 = shalt.err (!%p1619_p12)
}
  0x43   :  { %s1623_s2 = scalar_lea.vmem %s123_s0, 16  ;;  %s1627_s3 = scalar_lea.vmem %s123_s0, 32 }
  0x44   :  { %p1624_p13 = scmp.ne.s32.totalorder %s123_s0, %s1623_s2  ;;  %p1628_p0 = scmp.lt.s32.totalorder %s123_s0, %s123_s0 }
  0x45   :  { %p1629_p1 = scmp.lt.s32.totalorder %s1627_s3, %s1623_s2 }
  0x47   :  { %p1630_p2 = por %p1629_p1, %p1628_p0 }
  0x49   :  { %p1631_p3 = pnand %p1630_p2, %p1624_p13 }
  0x4b   :  { %1634 = shalt.err (!%p1631_p3)
}
  0x4c   :  { %125 = dma.hbm_to_vmem [thread:$0]  %s2196_s10, 16, %s123_s0, [#allocation14]  }
  0x4d   :  { %s1785_s6 = smov [#allocation2]   ;;  %s1786_s28 = smov [#allocation6]  }
  0x4e   :  { %s37_s30 = sshll.u32 %s1785_s6, 4  ;;  %s65_s23 = sshll.u32 %s1786_s28, 4  ;;  %s38_s30 = int_to_ptr.vmem [resolvable:$true] %s37_s30  ;;  %s1947_s23 = int_to_ptr.vmem [resolvable:$true] %s65_s23 }
  0x4f   :  { %s2209_s19 = sld [smem:[#allocation25_spill]] }
  0x55   :  { %s1635_s1 = scalar_lea.hbm %s2209_s19, 1024 }
  0x56   :  { %p1636_p4 = scmp.ne.s32.totalorder %s2209_s19, %s1635_s1  ;;  %p1639_p5 = scmp.lt.u32.totalorder %s1635_s1, %s2209_s19 }
  0x58   :  { %p1641_p6 = pnand %p1639_p5, %p1636_p4 }
  0x5a   :  { %1644 = shalt.err (!%p1641_p6)
}
  0x5b   :  { %s1645_s10 = scalar_lea.vmem %s38_s30, 1024  ;;  %p1650_p8 = scmp.lt.s32.totalorder %s38_s30, %s38_s30 }
  0x5c   :  { %p1646_p7 = scmp.ne.s32.totalorder %s38_s30, %s1645_s10  ;;  %p1651_p9 = scmp.lt.s32.totalorder %s1645_s10, %s1645_s10 }
  0x5e   :  { %p1652_p10 = por %p1651_p9, %p1650_p8 }
  0x60   :  { %p1653_p11 = pnand %p1652_p10, %p1646_p7 }
  0x62   :  { %1656 = shalt.err (!%p1653_p11)
}
  0x63   :  { %43 = dma.hbm_to_vmem [thread:$0]  %s2209_s19, 1024, %s38_s30, [#allocation3], %s1781_s24, %s1781_s24, %s1782_s25  }
  0x64   :  { %s1657_s6 = scalar_lea.hbm %s2191_s5, 1024 }
  0x65   :  { %p1658_p12 = scmp.ne.s32.totalorder %s2191_s5, %s1657_s6  ;;  %p1661_p13 = scmp.lt.u32.totalorder %s1657_s6, %s2191_s5 }
  0x67   :  { %p1663_p0 = pnand %p1661_p13, %p1658_p12 }
  0x69   :  { %1666 = shalt.err (!%p1663_p0)
}
  0x6a   :  { %s1667_s20 = scalar_lea.vmem %s1947_s23, 1024  ;;  %p1672_p2 = scmp.lt.s32.totalorder %s1947_s23, %s1947_s23 }
  0x6b   :  { %p1668_p1 = scmp.ne.s32.totalorder %s1947_s23, %s1667_s20  ;;  %p1673_p3 = scmp.lt.s32.totalorder %s1667_s20, %s1667_s20 }
  0x6d   :  { %p1674_p4 = por %p1673_p3, %p1672_p2 }
  0x6f   :  { %p1675_p5 = pnand %p1674_p4, %p1668_p1 }
  0x71   :  { %1678 = shalt.err (!%p1675_p5)
}
  0x72   :  { %71 = dma.hbm_to_vmem [thread:$0]  %s2191_s5, 1024, %s1947_s23, [#allocation5], %s1781_s24, %s1781_s24, %s1782_s25  }
  0x73   :  { %s1787_s21 = smov [#allocation9]   ;;  %s1788_s2 = smov [#allocation12]  }
  0x74   :  { %s87_s22 = sshll.u32 %s1787_s21, 4  ;;  %s109_s10 = sshll.u32 %s1788_s2, 4  ;;  %s88_s22 = int_to_ptr.vmem [resolvable:$true] %s87_s22  ;;  %s1984_s10 = int_to_ptr.vmem [resolvable:$true] %s109_s10 }
  0x75   :  { %s1679_s8 = scalar_lea.hbm %s2193_s7, 1024 }
  0x76   :  { %p1680_p6 = scmp.ne.s32.totalorder %s2193_s7, %s1679_s8  ;;  %p1683_p7 = scmp.lt.u32.totalorder %s1679_s8, %s2193_s7 }
  0x78   :  { %p1685_p8 = pnand %p1683_p7, %p1680_p6 }
  0x7a   :  { %1688 = shalt.err (!%p1685_p8)
}
  0x7b   :  { %s1689_s5 = scalar_lea.vmem %s88_s22, 1024  ;;  %p1694_p10 = scmp.lt.s32.totalorder %s88_s22, %s88_s22 }
  0x7c   :  { %p1690_p9 = scmp.ne.s32.totalorder %s88_s22, %s1689_s5  ;;  %p1695_p11 = scmp.lt.s32.totalorder %s1689_s5, %s1689_s5 }
  0x7e   :  { %p1696_p12 = por %p1695_p11, %p1694_p10 }
  0x80   :  { %p1697_p13 = pnand %p1696_p12, %p1690_p9 }
  0x82   :  { %1700 = shalt.err (!%p1697_p13)
}
  0x83   :  { %93 = dma.hbm_to_vmem [thread:$0]  %s2193_s7, 1024, %s88_s22, [#allocation8], %s1781_s24, %s1781_s24, %s1782_s25  }
  0x84   :  { %s1701_s30 = scalar_lea.hbm %s2195_s9, 1024 }
  0x85   :  { %p1702_p0 = scmp.ne.s32.totalorder %s2195_s9, %s1701_s30  ;;  %p1705_p1 = scmp.lt.u32.totalorder %s1701_s30, %s2195_s9 }
  0x87   :  { %p1707_p2 = pnand %p1705_p1, %p1702_p0 }
  0x89   :  { %1710 = shalt.err (!%p1707_p2)
}
  0x8a   :  { %s1711_s3 = scalar_lea.vmem %s1984_s10, 1024  ;;  %p1716_p4 = scmp.lt.s32.totalorder %s1984_s10, %s1984_s10 }
  0x8b   :  { %p1712_p3 = scmp.ne.s32.totalorder %s1984_s10, %s1711_s3  ;;  %p1717_p5 = scmp.lt.s32.totalorder %s1711_s3, %s1711_s3 }
  0x8d   :  { %p1718_p6 = por %p1717_p5, %p1716_p4 }
  0x8f   :  { %p1719_p7 = pnand %p1718_p6, %p1712_p3 }
  0x91   :  { %1722 = shalt.err (!%p1719_p7)
}
  0x92   :  { %115 = dma.hbm_to_vmem [thread:$0]  %s2195_s9, 1024, %s1984_s10, [#allocation11], %s1781_s24, %s1781_s24, %s1782_s25  }
  0x93   :  { %s1789_s8 = smov [#allocation15]   ;;  %s1790_s6 = smov [#allocation16]  }
  0x94   :  { %s135_s27 = sshll.u32 %s1789_s8, 4  ;;  %s149_s28 = sshll.u32 %s1790_s6, 4  ;;  %s136_s27 = int_to_ptr.vmem [resolvable:$true] %s135_s27  ;;  %s2021_s28 = int_to_ptr.vmem [resolvable:$true] %s149_s28 }
  0x95   :  { %s1723_s23 = scalar_lea.hbm %s2199_s13, 1024 }
  0x96   :  { %p1724_p8 = scmp.ne.s32.totalorder %s2199_s13, %s1723_s23  ;;  %p1727_p9 = scmp.lt.u32.totalorder %s1723_s23, %s2199_s13 }
  0x98   :  { %p1729_p10 = pnand %p1727_p9, %p1724_p8 }
  0x9a   :  { %1732 = shalt.err (!%p1729_p10)
}
  0x9b   :  { %s1733_s9 = scalar_lea.vmem %s136_s27, 1024  ;;  %p1738_p12 = scmp.lt.s32.totalorder %s136_s27, %s136_s27 }
  0x9c   :  { %p1734_p11 = scmp.ne.s32.totalorder %s136_s27, %s1733_s9  ;;  %p1739_p13 = scmp.lt.s32.totalorder %s1733_s9, %s1733_s9 }
  0x9e   :  { %p1740_p0 = por %p1739_p13, %p1738_p12 }
  0xa0   :  { %p1741_p1 = pnand %p1740_p0, %p1734_p11 }
  0xa2   :  { %1744 = shalt.err (!%p1741_p1)
}
  0xa3   :  { %141 = dma.hbm_to_vmem [thread:$0]  %s2199_s13, 1024, %s136_s27, [#allocation14], %s1781_s24, %s1781_s24, %s1782_s25  }
  0xa4   :  { %s1745_s0 = scalar_lea.hbm %s2201_s15, 1024 }
  0xa5   :  { %p1746_p2 = scmp.ne.s32.totalorder %s2201_s15, %s1745_s0  ;;  %p1749_p3 = scmp.lt.u32.totalorder %s1745_s0, %s2201_s15 }
  0xa7   :  { %p1751_p4 = pnand %p1749_p3, %p1746_p2 }
  0xa9   :  { %1754 = shalt.err (!%p1751_p4)
}
  0xaa   :  { %s1755_s6 = scalar_lea.vmem %s2021_s28, 1024  ;;  %p1760_p6 = scmp.lt.s32.totalorder %s2021_s28, %s2021_s28 }
  0xab   :  { %p1756_p5 = scmp.ne.s32.totalorder %s2021_s28, %s1755_s6  ;;  %p1761_p7 = scmp.lt.s32.totalorder %s1755_s6, %s1755_s6 }
  0xad   :  { %p1762_p8 = por %p1761_p7, %p1760_p6 }
  0xaf   :  { %p1763_p9 = pnand %p1762_p8, %p1756_p5 }
  0xb1   :  { %1766 = shalt.err (!%p1763_p9)
}
  0xb2   :  { %155 = dma.hbm_to_vmem [thread:$0]  %s2201_s15, 1024, %s2021_s28, [#allocation17], %s1781_s24, %s1781_s24, %s1782_s25  }
  0xb3   :  { %1767 = dma.done.wait [#allocation3], 1024  }
  0xb4   :  { %1768 = vsyncadd [#allocation3], 4294966272 }
  0xb5   :  { %1769 = dma.done.wait [#allocation5], 2048  }
  0xb6   :  { %1770 = vsyncadd [#allocation5], 4294965248 }
  0xb7   :  { %1771 = dma.done.wait [#allocation8], 1040  }
  0xb8   :  { %1772 = vsyncadd [#allocation8], 4294966256 }
  0xb9   :  { %1773 = dma.done.wait [#allocation11], 1040  }
  0xba   :  { %1774 = vsyncadd [#allocation11], 4294966256 }
  0xbb   :  { %1775 = dma.done.wait [#allocation14], 1040  }
  0xbc   :  { %1776 = vsyncadd [#allocation14], 4294966256 }
  0xbd   :  { %1777 = dma.done.wait [#allocation17], 1024  }
  0xbe   :  { %1778 = vsyncadd [#allocation17], 4294966272  ;;  %v1791_v0 = vmov 0.0   ;;  %vm1792_vm0 = vmmov 0   ;;  %v1482_v1 = vld [vmem:[#allocation2] sm:$0xff]   ;;  %v1483_v2 = vld [vmem:[#allocation2 + $0x8] sm:$0xff]  }
  0xbf   :  { %1308 = vmatprep.subr.bf16.mxu0 %v1791_v0  ;;  %1324 = vmatprep.mubr.msk.bf16.mxu0 %vm1792_vm0, %v1791_v0  ;;  %v1484_v3 = vld [vmem:[#allocation2 + $0x10] sm:$0xff]   ;;  %v1491_v4 = vld [vmem:[#allocation4] sm:$0xff]   ;;  %v1485_v5 = vld [vmem:[#allocation2 + $0x18] sm:$0xff]   ;;  %s2210_s25 = sld [smem:[#allocation24_spill]]  ;;  %s2211_s5 = sld [smem:[#allocation26_spill]] }
  0xc0   :  { %1328 = vmatprep.subr.bf16.mxu1 %v1791_v0  ;;  %1344 = vmatprep.mubr.msk.bf16.mxu1 %vm1792_vm0, %v1791_v0  ;;  %v1492_v6 = vld [vmem:[#allocation4 + $0x8] sm:$0xff]   ;;  %v1486_v7 = vld [vmem:[#allocation2 + $0x20] sm:$0xff]   ;;  %v1493_v8 = vld [vmem:[#allocation4 + $0x10] sm:$0xff]  }
  0xc1   :  { %1309 = vmatpush3.bf16.msra.mxu0 %v1482_v1  ;;  %1329 = vmatpush3.bf16.msra.mxu1 %v1491_v4  ;;  %v1487_v9 = vld [vmem:[#allocation2 + $0x28] sm:$0xff]   ;;  %v1494_v10 = vld [vmem:[#allocation4 + $0x18] sm:$0xff]   ;;  %v1488_v11 = vld [vmem:[#allocation2 + $0x30] sm:$0xff]  }
  0xc2   :  { %1310 = vmatprep.subr.bf16.mxu0 %v1791_v0  ;;  %1330 = vmatprep.subr.bf16.mxu1 %v1791_v0  ;;  %v1495_v12 = vld [vmem:[#allocation4 + $0x20] sm:$0xff]   ;;  %v1489_v13 = vld [vmem:[#allocation2 + $0x38] sm:$0xff]   ;;  %v1496_v14 = vld [vmem:[#allocation4 + $0x28] sm:$0xff]  }
  0xc3   :  { %v1497_v16 = vld [vmem:[#allocation4 + $0x30] sm:$0xff]   ;;  %v1498_v17 = vld [vmem:[#allocation4 + $0x38] sm:$0xff]   ;;  %v1499_v18 = vld [vmem:[#allocation6] sm:$0xff]  }
  0xc4   :  { %v1500_v19 = vld [vmem:[#allocation6 + $0x8] sm:$0xff]   ;;  %v1501_v20 = vld [vmem:[#allocation6 + $0x10] sm:$0xff]   ;;  %v1502_v21 = vld [vmem:[#allocation6 + $0x18] sm:$0xff]  }
  0xc5   :  { %1311 = vmatpush3.bf16.msra.mxu0 %v1483_v2  ;;  %1331 = vmatpush3.bf16.msra.mxu1 %v1492_v6  ;;  %v1490_v15 = vld [vmem:[%s2210_s25] sm:$0xff]   ;;  %v1504_v23 = vld [vmem:[#allocation6 + $0x28] sm:$0xff]   ;;  %v1505_v34 = vld [vmem:[#allocation6 + $0x30] sm:$0xff]  }
  0xc6   :  { %1312 = vmatprep.subr.bf16.mxu0 %v1791_v0  ;;  %1332 = vmatprep.subr.bf16.mxu1 %v1791_v0  ;;  %v1503_v22 = vld [vmem:[#allocation6 + $0x20] sm:$0xff]   ;;  %v1506_v35 = vld [vmem:[#allocation6 + $0x38] sm:$0xff]   ;;  %v1508_v37 = vld [vmem:[#allocation9 + $0x8] sm:$0xff]  }
  0xc7   :  { %v1145_v24 = vld [vmem:[%s2211_s5] ss:$0 sm:$0xff]  ;;  %v1507_v36 = vld [vmem:[#allocation9] sm:$0xff]   ;;  %v1509_v38 = vld [vmem:[#allocation9 + $0x10] sm:$0xff]  }
  0xc8   :  { %v1510_v39 = vld [vmem:[#allocation9 + $0x18] sm:$0xff]   ;;  %v1511_v40 = vld [vmem:[#allocation9 + $0x20] sm:$0xff]   ;;  %v1512_v41 = vld [vmem:[#allocation9 + $0x28] sm:$0xff]  }
  0xc9   :  { %1313 = vmatpush3.bf16.msra.mxu0 %v1484_v3  ;;  %1333 = vmatpush3.bf16.msra.mxu1 %v1493_v8  ;;  %v1155_v42 = vld [vmem:[%s2190_s4] ss:$0 sm:$0xff]  ;;  %v1513_v52 = vld [vmem:[#allocation9 + $0x30] sm:$0xff]   ;;  %v1515_v54 = vld [vmem:[#allocation12] sm:$0xff]  }
  0xca   :  { %1314 = vmatprep.subr.bf16.mxu0 %v1791_v0  ;;  %1334 = vmatprep.subr.bf16.mxu1 %v1791_v0  ;;  %v1514_v53 = vld [vmem:[#allocation9 + $0x38] sm:$0xff]   ;;  %v1516_v55 = vld [vmem:[#allocation12 + $0x8] sm:$0xff]   ;;  %v1519_v58 = vld [vmem:[#allocation12 + $0x20] sm:$0xff]  }
  0xcb   :  { %v1517_v56 = vld [vmem:[#allocation12 + $0x10] sm:$0xff]   ;;  %v1518_v57 = vld [vmem:[#allocation12 + $0x18] sm:$0xff]   ;;  %v1520_v59 = vld [vmem:[#allocation12 + $0x28] sm:$0xff]  }
  0xcc   :  { %v1164_v60 = vld [vmem:[#allocation7] ss:$0 sm:$0xff] }
  0xcd   :  { %1315 = vmatpush3.bf16.msra.mxu0 %v1485_v5  ;;  %1335 = vmatpush3.bf16.msra.mxu1 %v1494_v10  ;;  %v1522_v8 = vld [vmem:[#allocation12 + $0x38] sm:$0xff]   ;;  %v1524_v10 = vld [vmem:[%s2197_s11 + $0x8] sm:$0xff]  }
  0xce   :  { %1316 = vmatprep.subr.bf16.mxu0 %v1791_v0  ;;  %1336 = vmatprep.subr.bf16.mxu1 %v1791_v0 }
  0xd1   :  { %1317 = vmatpush3.bf16.msra.mxu0 %v1486_v7  ;;  %1337 = vmatpush3.bf16.msra.mxu1 %v1495_v12  ;;  %v1521_v7 = vld [vmem:[#allocation12 + $0x30] sm:$0xff]  }
  0xd2   :  { %1318 = vmatprep.subr.bf16.mxu0 %v1791_v0  ;;  %1338 = vmatprep.subr.bf16.mxu1 %v1791_v0  ;;  %v1526_v12 = vld [vmem:[%s2197_s11 + $0x18] sm:$0xff]  }
  0xd5   :  { %1319 = vmatpush3.bf16.msra.mxu0 %v1487_v9  ;;  %1339 = vmatpush3.bf16.msra.mxu1 %v1496_v14  ;;  %v1523_v9 = vld [vmem:[%s2197_s11] sm:$0xff]   ;;  %v1528_v14 = vld [vmem:[%s2197_s11 + $0x28] sm:$0xff]  }
  0xd6   :  { %1320 = vmatprep.subr.bf16.mxu0 %v1791_v0  ;;  %1340 = vmatprep.subr.bf16.mxu1 %v1791_v0 }
  0xd9   :  { %1321 = vmatpush3.bf16.msra.mxu0 %v1488_v11  ;;  %1341 = vmatpush3.bf16.msra.mxu1 %v1497_v16  ;;  %v1525_v11 = vld [vmem:[%s2197_s11 + $0x10] sm:$0xff]  }
  0xda   :  { %1322 = vmatprep.subr.bf16.mxu0 %v1791_v0  ;;  %1342 = vmatprep.subr.bf16.mxu1 %v1791_v0 }
  0xdd   :  { %1323 = vmatpush3.bf16.msra.mxu0 %v1489_v13  ;;  %1343 = vmatpush3.bf16.msra.mxu1 %v1498_v17  ;;  %v1527_v13 = vld [vmem:[%s2197_s11 + $0x20] sm:$0xff]  }
  0xde   :  { %1348 = vmatprep.subr.bf16.mxu0 %v1791_v0  ;;  %1368 = vmatprep.subr.bf16.mxu1 %v1791_v0 }
  0xe0   :  { %1325 = vmatmul.mubr.bf16.vlgmr.msra.gmra.mrb[0].mxu0 %v1490_v15  ;;  %v1173_v15 = vld [vmem:[#allocation10] ss:$0 sm:$0xff] }
  0xe1   :  { %1364 = vmatprep.mubr.msk.bf16.mxu0 %vm1792_vm0, %v1791_v0  ;;  %1349 = vmatpush3.bf16.msra.mxu0 %v1499_v18 }
  0xe2   :  { %1350 = vmatprep.subr.bf16.mxu0 %v1791_v0 }
  0xe5   :  { %1351 = vmatpush3.bf16.msra.mxu0 %v1500_v19 }
  0xe6   :  { %1352 = vmatprep.subr.bf16.mxu0 %v1791_v0 }
  0xe9   :  { %1353 = vmatpush3.bf16.msra.mxu0 %v1501_v20 }
  0xea   :  { %1354 = vmatprep.subr.bf16.mxu0 %v1791_v0 }
  0xed   :  { %1355 = vmatpush3.bf16.msra.mxu0 %v1502_v21 }
  0xee   :  { %1356 = vmatprep.subr.bf16.mxu0 %v1791_v0 }
  0xf1   :  { %1357 = vmatpush3.bf16.msra.mxu0 %v1503_v22 }
  0xf2   :  { %1358 = vmatprep.subr.bf16.mxu0 %v1791_v0 }
  0xf5   :  { %1359 = vmatpush3.bf16.msra.mxu0 %v1504_v23  ;;  %v1529_v23 = vld [vmem:[%s2197_s11 + $0x30] sm:$0xff]  }
  0xf6   :  { %1360 = vmatprep.subr.bf16.mxu0 %v1791_v0 }
  0xf9   :  { %1361 = vmatpush3.bf16.msra.mxu0 %v1505_v34 }
  0xfa   :  { %1362 = vmatprep.subr.bf16.mxu0 %v1791_v0 }
  0xfd   :  { %1363 = vmatpush3.bf16.msra.mxu0 %v1506_v35 }
  0xfe   :  { %1388 = vmatprep.subr.bf16.mxu0 %v1791_v0 }
 0x1b3   :  { %v302_v25 = vpop.f32.mrb[0].mxu0 }
 0x1b4   :  { %v303_v26 = vadd.f32 %v1145_v24, %v302_v25  ;;  %v1326_v27 = vpop.f32.mrb[1].mxu0  ;;  %v1531_v25 = vld [vmem:[#allocation15] sm:$0xff]  }
 0x1b5   :  { %v305_v28 = vpop.f32.mrb[2].mxu0  ;;  %v1533_v27 = vld [vmem:[#allocation15 + $0x10] sm:$0xff]  }
 0x1b6   :  { %v306_v29 = vadd.f32 %v1145_v24, %v305_v28  ;;  %v1327_v30 = vpop.f32.mrb[3].mxu0  ;;  %v309_v31 = vmax.f32 %v303_v26, 0.0  ;;  %v1530_v24 = vld [vmem:[%s2197_s11 + $0x38] sm:$0xff]   ;;  %v1532_v26 = vld [vmem:[#allocation15 + $0x8] sm:$0xff]  }
 0x1b7   :  { %v1534_v28 = vld [vmem:[#allocation15 + $0x18] sm:$0xff]   ;;  %v1536_v30 = vld [vmem:[#allocation15 + $0x28] sm:$0xff]  }
 0x1b8   :  { %v310_v32 = vmax.f32 %v306_v29, 0.0  ;;  %v1535_v29 = vld [vmem:[#allocation15 + $0x20] sm:$0xff]  }
 0x1ba   :  { %v311_v33 = vpack.c.bf16 %v310_v32, %v309_v31  ;;  %v1184_v31 = vld [vmem:[#allocation13] ss:$0 sm:$0xff] }
 0x1bc   :  { %1345 = vmatmul.mubr.bf16.vlgmr.msra.gmra.mrb[0].mxu1 %v311_v33 }
 0x1bd   :  { %1384 = vmatprep.mubr.msk.bf16.mxu1 %vm1792_vm0, %v1791_v0  ;;  %1369 = vmatpush3.bf16.msra.mxu1 %v1507_v36 }
 0x1be   :  { %1370 = vmatprep.subr.bf16.mxu1 %v1791_v0 }
 0x1c1   :  { %1371 = vmatpush3.bf16.msra.mxu1 %v1508_v37 }
 0x1c2   :  { %1372 = vmatprep.subr.bf16.mxu1 %v1791_v0 }
 0x1c5   :  { %1373 = vmatpush3.bf16.msra.mxu1 %v1509_v38 }
 0x1c6   :  { %1374 = vmatprep.subr.bf16.mxu1 %v1791_v0 }
 0x1c9   :  { %1375 = vmatpush3.bf16.msra.mxu1 %v1510_v39 }
 0x1ca   :  { %1376 = vmatprep.subr.bf16.mxu1 %v1791_v0 }
 0x1cd   :  { %1377 = vmatpush3.bf16.msra.mxu1 %v1511_v40 }
 0x1ce   :  { %1378 = vmatprep.subr.bf16.mxu1 %v1791_v0 }
 0x1d1   :  { %1379 = vmatpush3.bf16.msra.mxu1 %v1512_v41  ;;  %v1537_v41 = vld [vmem:[#allocation15 + $0x30] sm:$0xff]  }
 0x1d2   :  { %1380 = vmatprep.subr.bf16.mxu1 %v1791_v0 }
 0x1d5   :  { %1381 = vmatpush3.bf16.msra.mxu1 %v1513_v52 }
 0x1d6   :  { %1382 = vmatprep.subr.bf16.mxu1 %v1791_v0 }
 0x1d9   :  { %1383 = vmatpush3.bf16.msra.mxu1 %v1514_v53 }
 0x1da   :  { %1408 = vmatprep.subr.bf16.mxu1 %v1791_v0 }
 0x28f   :  { %v417_v43 = vpop.f32.mrb[0].mxu1 }
 0x290   :  { %v418_v44 = vadd.f32 %v1155_v42, %v417_v43  ;;  %v1346_v45 = vpop.f32.mrb[1].mxu1  ;;  %v1539_v43 = vld [vmem:[#allocation16] sm:$0xff]  }
 0x291   :  { %v420_v46 = vpop.f32.mrb[2].mxu1  ;;  %v1541_v45 = vld [vmem:[#allocation16 + $0x10] sm:$0xff]  }
 0x292   :  { %v421_v47 = vadd.f32 %v1155_v42, %v420_v46  ;;  %v1347_v48 = vpop.f32.mrb[3].mxu1  ;;  %v424_v49 = vmax.f32 %v418_v44, 0.0  ;;  %v1538_v42 = vld [vmem:[#allocation15 + $0x38] sm:$0xff]   ;;  %v1540_v44 = vld [vmem:[#allocation16 + $0x8] sm:$0xff]  }
 0x293   :  { %v1542_v46 = vld [vmem:[#allocation16 + $0x18] sm:$0xff]   ;;  %v1544_v48 = vld [vmem:[#allocation16 + $0x28] sm:$0xff]  }
 0x294   :  { %v425_v50 = vmax.f32 %v421_v47, 0.0  ;;  %v1543_v47 = vld [vmem:[#allocation16 + $0x20] sm:$0xff]  }
 0x296   :  { %v426_v51 = vpack.c.bf16 %v425_v50, %v424_v49  ;;  %v1193_v49 = vld [vmem:[%s2198_s12] ss:$0 sm:$0xff] }
 0x298   :  { %1365 = vmatmul.mubr.bf16.vlgmr.msra.gmra.mrb[4].mxu0 %v426_v51 }
 0x299   :  { %1404 = vmatprep.mubr.msk.bf16.mxu0 %vm1792_vm0, %v1791_v0  ;;  %1389 = vmatpush3.bf16.msra.mxu0 %v1515_v54 }
 0x29a   :  { %1390 = vmatprep.subr.bf16.mxu0 %v1791_v0 }
 0x29d   :  { %1391 = vmatpush3.bf16.msra.mxu0 %v1516_v55 }
 0x29e   :  { %1392 = vmatprep.subr.bf16.mxu0 %v1791_v0 }
 0x2a1   :  { %1393 = vmatpush3.bf16.msra.mxu0 %v1517_v56 }
 0x2a2   :  { %1394 = vmatprep.subr.bf16.mxu0 %v1791_v0 }
 0x2a5   :  { %1395 = vmatpush3.bf16.msra.mxu0 %v1518_v57 }
 0x2a6   :  { %1396 = vmatprep.subr.bf16.mxu0 %v1791_v0 }
 0x2a9   :  { %1397 = vmatpush3.bf16.msra.mxu0 %v1519_v58 }
 0x2aa   :  { %1398 = vmatprep.subr.bf16.mxu0 %v1791_v0 }
 0x2ad   :  { %1399 = vmatpush3.bf16.msra.mxu0 %v1520_v59  ;;  %v1545_v59 = vld [vmem:[#allocation16 + $0x30] sm:$0xff]  }
 0x2ae   :  { %1400 = vmatprep.subr.bf16.mxu0 %v1791_v0 }
 0x2b1   :  { %1401 = vmatpush3.bf16.msra.mxu0 %v1521_v7 }
 0x2b2   :  { %1402 = vmatprep.subr.bf16.mxu0 %v1791_v0 }
 0x2b5   :  { %1403 = vmatpush3.bf16.msra.mxu0 %v1522_v8 }
 0x2b6   :  { %1428 = vmatprep.subr.bf16.mxu0 %v1791_v0 }
 0x36b   :  { %v532_v61 = vpop.f32.mrb[4].mxu0 }
 0x36c   :  { %v533_v62 = vadd.f32 %v1164_v60, %v532_v61  ;;  %v1366_v63 = vpop.f32.mrb[5].mxu0  ;;  %v1202_v61 = vld [vmem:[%s2200_s14] ss:$0 sm:$0xff] }
 0x36d   :  { %v535_v1 = vpop.f32.mrb[6].mxu0 }
 0x36e   :  { %v536_v2 = vadd.f32 %v1164_v60, %v535_v1  ;;  %v1367_v3 = vpop.f32.mrb[7].mxu0  ;;  %v539_v4 = vmax.f32 %v533_v62, 0.0  ;;  %v1546_v60 = vld [vmem:[#allocation16 + $0x38] sm:$0xff]  }
 0x370   :  { %v540_v5 = vmax.f32 %v536_v2, 0.0 }
 0x372   :  { %v541_v6 = vpack.c.bf16 %v540_v5, %v539_v4 }
 0x374   :  { %1385 = vmatmul.mubr.bf16.vlgmr.msra.gmra.mrb[4].mxu1 %v541_v6 }
 0x375   :  { %1424 = vmatprep.mubr.msk.bf16.mxu1 %vm1792_vm0, %v1791_v0  ;;  %1409 = vmatpush3.bf16.msra.mxu1 %v1523_v9 }
 0x376   :  { %1410 = vmatprep.subr.bf16.mxu1 %v1791_v0 }
 0x379   :  { %1411 = vmatpush3.bf16.msra.mxu1 %v1524_v10 }
 0x37a   :  { %1412 = vmatprep.subr.bf16.mxu1 %v1791_v0 }
 0x37d   :  { %1413 = vmatpush3.bf16.msra.mxu1 %v1525_v11 }
 0x37e   :  { %1414 = vmatprep.subr.bf16.mxu1 %v1791_v0 }
 0x381   :  { %1415 = vmatpush3.bf16.msra.mxu1 %v1526_v12 }
 0x382   :  { %1416 = vmatprep.subr.bf16.mxu1 %v1791_v0 }
 0x385   :  { %1417 = vmatpush3.bf16.msra.mxu1 %v1527_v13 }
 0x386   :  { %1418 = vmatprep.subr.bf16.mxu1 %v1791_v0 }
 0x389   :  { %1419 = vmatpush3.bf16.msra.mxu1 %v1528_v14 }
 0x38a   :  { %1420 = vmatprep.subr.bf16.mxu1 %v1791_v0 }
 0x38d   :  { %1421 = vmatpush3.bf16.msra.mxu1 %v1529_v23 }
 0x38e   :  { %1422 = vmatprep.subr.bf16.mxu1 %v1791_v0 }
 0x391   :  { %1423 = vmatpush3.bf16.msra.mxu1 %v1530_v24 }
 0x392   :  { %1448 = vmatprep.subr.bf16.mxu1 %v1791_v0 }
 0x447   :  { %v647_v16 = vpop.f32.mrb[4].mxu1 }
 0x448   :  { %v1386_v17 = vpop.f32.mrb[5].mxu1  ;;  %v648_v19 = vadd.f32 %v1173_v15, %v647_v16 }
 0x449   :  { %v650_v18 = vpop.f32.mrb[6].mxu1 }
 0x44a   :  { %v651_v20 = vadd.f32 %v1173_v15, %v650_v18  ;;  %v1387_v21 = vpop.f32.mrb[7].mxu1 }
 0x44c   :  { %v654_v22 = vpack.c.bf16 %v651_v20, %v648_v19 }
 0x44e   :  { %1230 = vst [vmem:[%s2204_s18] sm:$0xff] %v654_v22   ;;  %1405 = vmatmul.mubr.bf16.vlgmr.msra.gmra.mrb[8].mxu0 %v654_v22 }
 0x44f   :  { %1444 = vmatprep.mubr.msk.bf16.mxu0 %vm1792_vm0, %v1791_v0  ;;  %1429 = vmatpush3.bf16.msra.mxu0 %v1531_v25 }
 0x450   :  { %1430 = vmatprep.subr.bf16.mxu0 %v1791_v0 }
 0x453   :  { %1431 = vmatpush3.bf16.msra.mxu0 %v1532_v26 }
 0x454   :  { %1432 = vmatprep.subr.bf16.mxu0 %v1791_v0 }
 0x457   :  { %1433 = vmatpush3.bf16.msra.mxu0 %v1533_v27 }
 0x458   :  { %1434 = vmatprep.subr.bf16.mxu0 %v1791_v0 }
 0x45b   :  { %1435 = vmatpush3.bf16.msra.mxu0 %v1534_v28 }
 0x45c   :  { %1436 = vmatprep.subr.bf16.mxu0 %v1791_v0 }
 0x45f   :  { %1437 = vmatpush3.bf16.msra.mxu0 %v1535_v29 }
 0x460   :  { %1438 = vmatprep.subr.bf16.mxu0 %v1791_v0 }
 0x463   :  { %1439 = vmatpush3.bf16.msra.mxu0 %v1536_v30 }
 0x464   :  { %1440 = vmatprep.subr.bf16.mxu0 %v1791_v0 }
 0x467   :  { %1441 = vmatpush3.bf16.msra.mxu0 %v1537_v41 }
 0x468   :  { %1442 = vmatprep.subr.bf16.mxu0 %v1791_v0 }
 0x46b   :  { %1443 = vmatpush3.bf16.msra.mxu0 %v1538_v42 }
 0x521   :  { %v769_v32 = vpop.f32.mrb[8].mxu0 }
 0x522   :  { %v770_v33 = vadd.f32 %v1184_v31, %v769_v32  ;;  %v1406_v34 = vpop.f32.mrb[9].mxu0 }
 0x523   :  { %v772_v35 = vpop.f32.mrb[10].mxu0 }
 0x524   :  { %v773_v36 = vadd.f32 %v1184_v31, %v772_v35  ;;  %v1407_v37 = vpop.f32.mrb[11].mxu0  ;;  %v776_v38 = vmax.f32 %v770_v33, 0.0 }
 0x526   :  { %v777_v39 = vmax.f32 %v773_v36, 0.0 }
 0x528   :  { %v778_v40 = vpack.c.bf16 %v777_v39, %v776_v38 }
 0x52a   :  { %1425 = vmatmul.mubr.bf16.vlgmr.msra.gmra.mrb[8].mxu1 %v778_v40 }
 0x52b   :  { %1464 = vmatprep.mubr.msk.bf16.mxu1 %vm1792_vm0, %v1791_v0  ;;  %1449 = vmatpush3.bf16.msra.mxu1 %v1539_v43 }
 0x52c   :  { %1450 = vmatprep.subr.bf16.mxu1 %v1791_v0 }
 0x52f   :  { %1451 = vmatpush3.bf16.msra.mxu1 %v1540_v44 }
 0x530   :  { %1452 = vmatprep.subr.bf16.mxu1 %v1791_v0 }
 0x533   :  { %1453 = vmatpush3.bf16.msra.mxu1 %v1541_v45 }
 0x534   :  { %1454 = vmatprep.subr.bf16.mxu1 %v1791_v0 }
 0x537   :  { %1455 = vmatpush3.bf16.msra.mxu1 %v1542_v46 }
 0x538   :  { %1456 = vmatprep.subr.bf16.mxu1 %v1791_v0 }
 0x53b   :  { %1457 = vmatpush3.bf16.msra.mxu1 %v1543_v47 }
 0x53c   :  { %1458 = vmatprep.subr.bf16.mxu1 %v1791_v0 }
 0x53f   :  { %1459 = vmatpush3.bf16.msra.mxu1 %v1544_v48 }
 0x540   :  { %1460 = vmatprep.subr.bf16.mxu1 %v1791_v0 }
 0x543   :  { %1461 = vmatpush3.bf16.msra.mxu1 %v1545_v59 }
 0x544   :  { %1462 = vmatprep.subr.bf16.mxu1 %v1791_v0  ;;  %v1211_v0 = vld [vmem:[%s2202_s16] ss:$0 sm:$0xff] }
 0x547   :  { %1463 = vmatpush3.bf16.msra.mxu1 %v1546_v60 }
 0x5fd   :  { %v884_v50 = vpop.f32.mrb[8].mxu1 }
 0x5fe   :  { %v885_v51 = vadd.f32 %v1193_v49, %v884_v50  ;;  %v1426_v52 = vpop.f32.mrb[9].mxu1 }
 0x5ff   :  { %v887_v53 = vpop.f32.mrb[10].mxu1 }
 0x600   :  { %v888_v54 = vadd.f32 %v1193_v49, %v887_v53  ;;  %v1427_v55 = vpop.f32.mrb[11].mxu1  ;;  %v891_v56 = vmax.f32 %v885_v51, 0.0 }
 0x602   :  { %v892_v57 = vmax.f32 %v888_v54, 0.0 }
 0x604   :  { %v893_v58 = vpack.c.bf16 %v892_v57, %v891_v56 }
 0x606   :  { %1445 = vmatmul.mubr.bf16.vlgmr.msra.gmra.mrb[12].mxu0 %v893_v58 }
 0x6d9   :  { %v999_v62 = vpop.f32.mrb[12].mxu0 }
 0x6da   :  { %v1000_v63 = vadd.f32 %v1202_v61, %v999_v62  ;;  %v1446_v1 = vpop.f32.mrb[13].mxu0 }
 0x6db   :  { %v1002_v2 = vpop.f32.mrb[14].mxu0 }
 0x6dc   :  { %v1003_v3 = vadd.f32 %v1202_v61, %v1002_v2  ;;  %v1447_v4 = vpop.f32.mrb[15].mxu0  ;;  %v1006_v5 = vmax.f32 %v1000_v63, 0.0 }
 0x6de   :  { %v1007_v6 = vmax.f32 %v1003_v3, 0.0 }
 0x6e0   :  { %v1008_v7 = vpack.c.bf16 %v1007_v6, %v1006_v5 }
 0x6e2   :  { %1465 = vmatmul.mubr.bf16.vlgmr.msra.gmra.mrb[12].mxu1 %v1008_v7 }
 0x7b5   :  { %v1114_v8 = vpop.f32.mrb[12].mxu1 }
 0x7b6   :  { %v1466_v9 = vpop.f32.mrb[13].mxu1  ;;  %v1115_v11 = vadd.f32 %v1211_v0, %v1114_v8 }
 0x7b7   :  { %v1117_v10 = vpop.f32.mrb[14].mxu1 }
 0x7b8   :  { %v1118_v12 = vadd.f32 %v1211_v0, %v1117_v10  ;;  %v1467_v13 = vpop.f32.mrb[15].mxu1 }
 0x7ba   :  { %v1234_v14 = vpack.c.bf16 %v1118_v12, %v1115_v11 }
 0x7bc   :  { %1235 = vst [vmem:[%s2203_s17] sm:$0xff] %v1234_v14  }
 0x7bd   :  { %1139 = vsyncpa [#allocation3], 1 }
 0x7be   :  { %1140 = vsyncpa [#allocation5], 1 }
 0x7bf   :  { %1141 = vsyncpa [#allocation8], 1 }
 0x7c0   :  { %1142 = vsyncpa [#allocation11], 1 }
 0x7c1   :  { %1143 = vsyncpa [#allocation14], 1 }
 0x7c2   :  { %1144 = vsyncpa [#allocation17], 1 }

</bundles_post_ra>
